<compile_context>
chip_gen: v5e
topology: v5e:2x2
jax: 0.10.0
libtpu: 0.0.40
codegen_flags: <defaults>
</compile_context>

<pallas_src>
import functools

import jax
import jax.numpy as jnp
from jax import lax
from jax.experimental import pallas as pl
from jax.experimental.pallas import tpu as pltpu


# --------------------------------------------------------------------------
# Kernels
# --------------------------------------------------------------------------
def _dense_kernel(x_ref, y_ref, out_ref, acc_ref, *,
                  n_rows, block_rows, tiles_per_part, needs_mask):
    """Dense-target path: y is a (TN, C) (one-hot or soft) target block."""
    i = pl.program_id(1)

    @pl.when(i == 0)
    def _():
        acc_ref[...] = jnp.zeros_like(acc_ref)

    x = x_ref[...].astype(jnp.float32)                  # (TN, C)
    y = y_ref[...].astype(jnp.float32)                  # (TN, C)

    # Numerically-stable softmax pieces (softmax itself never materialized).
    m = jnp.max(x, axis=1, keepdims=True)               # (TN, 1)
    e = jnp.exp(x - m)                                  # (TN, C)
    denom = jnp.sum(e, axis=1, keepdims=True)           # (TN, 1)

    # log(P + 1e-8) = log(e + 1e-8*denom) - log(denom)   (exact identity)
    t = y * jnp.log(e + 1e-8 * denom)                   # (TN, C)
    per_row = (jnp.sum(t, axis=1, keepdims=True)
               - jnp.log(denom) * jnp.sum(y, axis=1, keepdims=True))  # (TN, 1)

    if needs_mask:
        # Ragged last tile: zero out rows past the true batch size.  Keep the
        # where-select (not a multiply) so inf/NaN from garbage rows can't
        # propagate into the accumulator.
        p = pl.program_id(0)
        row = ((p * tiles_per_part + i) * block_rows
               + lax.broadcasted_iota(jnp.int32, per_row.shape, 0))
        per_row = jnp.where(row < n_rows, per_row, 0.0)

    acc_ref[...] += jnp.sum(per_row, keepdims=True)     # (1, 1)

    @pl.when(i == pl.num_programs(1) - 1)
    def _():
        # Each grid part writes its own disjoint (8,128) tile (lane-dense).
        out_ref[...] = jnp.broadcast_to(acc_ref[...], out_ref.shape)


def _labels_kernel(x_ref, lab_ref, out_ref, acc_ref, *,
                   n_rows, block_rows, tiles_per_part, needs_mask):
    """Label path: targets are int32 class ids, (TN, 1) block; log taken only
    on the picked per-row probability (one-hot semantics)."""
    i = pl.program_id(1)

    @pl.when(i == 0)
    def _():
        acc_ref[...] = jnp.zeros_like(acc_ref)

    x = x_ref[...].astype(jnp.float32)                  # (TN, C)
    lab = lab_ref[...]                                  # (TN, 1) int32

    m = jnp.max(x, axis=1, keepdims=True)               # (TN, 1)
    e = jnp.exp(x - m)                                  # (TN, C)
    denom = jnp.sum(e, axis=1, keepdims=True)           # (TN, 1)

    # Gather e at the label column via a masked row-sum (no dense one-hot).
    col = lax.broadcasted_iota(jnp.int32, x.shape, 1)   # (TN, C)
    e_pick = jnp.sum(jnp.where(col == lab, e, 0.0),
                     axis=1, keepdims=True)             # (TN, 1)

    # log(P[label] + 1e-8) = log(e_pick + 1e-8*denom) - log(denom)
    per_row = jnp.log(e_pick + 1e-8 * denom) - jnp.log(denom)   # (TN, 1)

    if needs_mask:
        p = pl.program_id(0)
        row = ((p * tiles_per_part + i) * block_rows
               + lax.broadcasted_iota(jnp.int32, per_row.shape, 0))
        per_row = jnp.where(row < n_rows, per_row, 0.0)

    acc_ref[...] += jnp.sum(per_row, keepdims=True)     # (1, 1)

    @pl.when(i == pl.num_programs(1) - 1)
    def _():
        out_ref[...] = jnp.broadcast_to(acc_ref[...], out_ref.shape)


# --------------------------------------------------------------------------
# Tiling / launch plumbing
# --------------------------------------------------------------------------
def _vmem_capacity_bytes():
    try:
        cap = int(pltpu.get_tpu_info().vmem_capacity_bytes)
        if cap > 0:
            return cap
    except Exception:
        pass
    return 64 * 1024 * 1024          # conservative fallback (v7x per-core)


def _resolve_block_rows(n, c, x_itemsize, aux_itemsize, aux_cols, block_rows):
    """Largest batch tile such that (double-buffered inputs + f32 temps) fits
    a per-generation VMEM budget.  Returns n (full array) when n is small."""
    if block_rows is None:
        # Per-row bytes: x double-buffered + aux double-buffered + ~4 f32 temps.
        per_row = c * (2 * x_itemsize + 16) + aux_cols * 2 * aux_itemsize
        budget = int(_vmem_capacity_bytes() * 0.55)
        tn = max(16, budget // per_row)
        tn = min(tn, 8192)           # keep per-step DMA latency reasonable
        tn -= tn % 16
    else:
        tn = min(int(block_rows), n)
    if n <= tn:
        return n                     # single tile; block == full array dims
    tn = max(8, tn - tn % 8)         # (8,128) sublane constraint
    return tn


def _cross_entropy_call(kernel_fn, x, aux, aux_cols, tn, transcendentals):
    n, c = x.shape
    total_tiles = (n + tn - 1) // tn
    # Use 2 "parallel" parts (v7x megacore) only when the tiles split evenly,
    # so no block index ever points past the array.
    num_parts = 2 if (total_tiles >= 2 and total_tiles % 2 == 0) else 1
    tiles_per_part = total_tiles // num_parts
    needs_mask = (n % tn) != 0

    kernel = functools.partial(kernel_fn, n_rows=n, block_rows=tn,
                               tiles_per_part=tiles_per_part,
                               needs_mask=needs_mask)

    def row_map(p, i):
        return (p * tiles_per_part + i, 0)

    x_itemsize = jnp.dtype(x.dtype).itemsize
    aux_itemsize = jnp.dtype(aux.dtype).itemsize
    cost = pl.CostEstimate(
        flops=6 * n * c,
        transcendentals=transcendentals,
        bytes_accessed=(n * c * x_itemsize + n * aux_cols * aux_itemsize
                        + num_parts * 8 * 128 * 4),
    )

    cap = _vmem_capacity_bytes()
    out = pl.pallas_call(
        kernel,
        out_shape=jax.ShapeDtypeStruct((num_parts * 8, 128), jnp.float32),
        grid_spec=pltpu.PrefetchScalarGridSpec(
            num_scalar_prefetch=0,
            grid=(num_parts, tiles_per_part),
            in_specs=[
                pl.BlockSpec((tn, c), row_map),
                pl.BlockSpec((tn, aux_cols), row_map),
            ],
            # Each part owns a full disjoint (8,128) output tile -> safe
            # cross-core writeback and unmasked lane-dense stores.
            out_specs=pl.BlockSpec((8, 128), lambda p, i: (p, 0)),
            scratch_shapes=[pltpu.VMEM((1, 1), jnp.float32)],
        ),
        compiler_params=pltpu.CompilerParams(
            dimension_semantics=("parallel", "arbitrary"),
            vmem_limit_bytes=int(cap * 3 // 4),
        ),
        cost_estimate=cost,
    )(x, aux)

    partials = out[::8, 0]                       # (num_parts,)
    return -(jnp.sum(partials) / n)


# --------------------------------------------------------------------------
# Public wrappers
# --------------------------------------------------------------------------
def one_hot_cross_entropy(x, y, *, block_rows=None):
    """Module-exact forward: x, y are (N, C); y is a dense (one-hot or soft)
    target matrix.  Returns scalar float32 loss.

    Perf tip: if y is truly one-hot ({0,1}), pass it as bf16 directly from its
    producer to halve its HBM traffic (the kernel computes in f32 regardless).
    """
    assert x.ndim == 2 and x.shape == y.shape
    n, c = x.shape
    tn = _resolve_block_rows(n, c, jnp.dtype(x.dtype).itemsize,
                             jnp.dtype(y.dtype).itemsize, c, block_rows)
    return _cross_entropy_call(_dense_kernel, x, y, c, tn,
                               transcendentals=2 * n * c)


def one_hot_cross_entropy_from_labels(x, labels, *, block_rows=None):
    """Fast path when targets are integer class ids (N,): never streams the
    dense one-hot matrix and takes log only on the picked probability."""
    assert x.ndim == 2 and labels.shape == (x.shape[0],)
    n, c = x.shape
    lab2d = labels.astype(jnp.int32).reshape(n, 1)
    tn = _resolve_block_rows(n, c, jnp.dtype(x.dtype).itemsize, 4, 1,
                             block_rows)
    return _cross_entropy_call(_labels_kernel, x, lab2d, 1, tn,
                               transcendentals=n * c + 2 * n)


def _reference(x, y):
    # Pure-JAX reference mirroring the PyTorch module.
    p = jax.nn.softmax(x, axis=1)
    l = y * jnp.log(p + 1e-8)
    return -jnp.mean(jnp.sum(l, axis=1), axis=0)


if __name__ == "__main__":
    key = jax.random.PRNGKey(0)
    kx, ky, ks = jax.random.split(key, 3)

    # Lane-filling class count (multiple of 128), small batch.
    N, C = 64, 128
    x = jax.random.normal(kx, (N, C), dtype=jnp.float32)
    labels = jax.random.randint(ky, (N,), 0, C)
    y = jax.nn.one_hot(labels, C, dtype=jnp.float32)    # one-hot targets

    ref = _reference(x, y)

    # 1) Dense-target path (module-exact interface), single tile.
    loss = jax.block_until_ready(one_hot_cross_entropy(x, y))
    assert jnp.allclose(loss, ref, rtol=1e-5, atol=1e-5), (loss, ref)

    # 2) Label fast path (no dense one-hot streamed from HBM).
    loss_l = jax.block_until_ready(one_hot_cross_entropy_from_labels(x, labels))
    assert jnp.allclose(loss_l, ref, rtol=1e-5, atol=1e-5), (loss_l, ref)

    # 3) Soft (non-one-hot) targets still match the module semantics.
    y_soft = jax.nn.softmax(jax.random.normal(ks, (N, C), jnp.float32), axis=1)
    ref_s = _reference(x, y_soft)
    loss_s = jax.block_until_ready(one_hot_cross_entropy(x, y_soft))
    assert jnp.allclose(loss_s, ref_s, rtol=1e-5, atol=1e-5), (loss_s, ref_s)

    # 4) Multi-tile path: cdiv(50,16)=4 tiles -> 2 "parallel" parts x 2 tiles,
    #    ragged last tile (50 % 16 != 0) exercises the row mask + accumulator.
    N2 = 50
    x2, y2, lab2 = x[:N2], y[:N2], labels[:N2]
    ref2 = _reference(x2, y2)
    loss2 = jax.block_until_ready(one_hot_cross_entropy(x2, y2, block_rows=16))
    assert jnp.allclose(loss2, ref2, rtol=1e-5, atol=1e-5), (loss2, ref2)
    loss2_l = jax.block_until_ready(
        one_hot_cross_entropy_from_labels(x2, lab2, block_rows=16))
    assert jnp.allclose(loss2_l, ref2, rtol=1e-5, atol=1e-5), (loss2_l, ref2)

    print("KERNEL_OK")
</pallas_src>

<mosaic_0001>
module attributes {stable_mosaic.version = 11 : i64} {
  func.func @_dense_kernel(%arg0: i32, %arg1: i32, %arg2: memref<64x128xf32, #tpu.memory_space<vmem>>, %arg3: memref<64x128xf32, #tpu.memory_space<vmem>>, %arg4: memref<8x128xf32, #tpu.memory_space<vmem>>, %arg5: memref<1x1xf32, #tpu.memory_space<vmem>>) attributes {dimension_semantics = [#tpu.dimension_semantics<parallel>, #tpu.dimension_semantics<arbitrary>], iteration_bounds = array<i64: 1, 1>, scalar_prefetch = 0 : i64, scratch_operands = 1 : i64, tpu.core_type = #tpu.core_type<tc>, window_params = [{transform_indices = @transform_0, window_bounds = array<i64: 64, 128>}, {transform_indices = @transform_1, window_bounds = array<i64: 64, 128>}, {transform_indices = @transform_2, window_bounds = array<i64: 8, 128>}]} {
    %c0_i32 = arith.constant 0 : i32
    %0 = arith.cmpi eq, %arg1, %c0_i32 : i32
    %1 = arith.extui %0 : i1 to i32
    %c0_i32_0 = arith.constant 0 : i32
    %2 = arith.cmpi ne, %1, %c0_i32_0 : i32
    scf.if %2 {
      %cst_15 = arith.constant 0.000000e+00 : f32
      %36 = vector.broadcast %cst_15 : f32 to vector<1x1xf32>
      %c0_16 = arith.constant 0 : index
      %c0_17 = arith.constant 0 : index
      %37 = vector.load %arg5[%c0_16, %c0_17] : memref<1x1xf32, #tpu.memory_space<vmem>>, vector<1x1xf32>
      tpu.vector_store %arg5[%c0_16, %c0_17], %36 {strides = array<i32>} : memref<1x1xf32, #tpu.memory_space<vmem>>, vector<1x1xf32>,
    } else {
    }
    %c0 = arith.constant 0 : index
    %c0_1 = arith.constant 0 : index
    %3 = vector.load %arg2[%c0, %c0_1] : memref<64x128xf32, #tpu.memory_space<vmem>>, vector<64x128xf32>
    %c0_2 = arith.constant 0 : index
    %c0_3 = arith.constant 0 : index
    %4 = vector.load %arg3[%c0_2, %c0_3] : memref<64x128xf32, #tpu.memory_space<vmem>>, vector<64x128xf32>
    %cst = arith.constant dense<0xFF800000> : vector<64xf32>
    %5 = vector.multi_reduction <maximumf>, %3, %cst [1] : vector<64x128xf32> to vector<64xf32>
    %6 = vector.shape_cast %5 : vector<64xf32> to vector<64x1xf32>
    %7 = vector.broadcast %6 : vector<64x1xf32> to vector<64x128xf32>
    %8 = arith.subf %3, %7 : vector<64x128xf32>
    %9 = math.exp %8 : vector<64x128xf32>
    %cst_4 = arith.constant dense<0.000000e+00> : vector<64xf32>
    %10 = vector.multi_reduction <add>, %9, %cst_4 [1] : vector<64x128xf32> to vector<64xf32>
    %11 = vector.shape_cast %10 : vector<64xf32> to vector<64x1xf32>
    %cst_5 = arith.constant 9.99999993E-9 : f32
    %12 = vector.broadcast %cst_5 : f32 to vector<64x1xf32>
    %13 = arith.mulf %12, %11 : vector<64x1xf32>
    %14 = vector.broadcast %13 : vector<64x1xf32> to vector<64x128xf32>
    %15 = arith.addf %9, %14 : vector<64x128xf32>
    %16 = math.log %15 : vector<64x128xf32>
    %17 = arith.mulf %4, %16 : vector<64x128xf32>
    %cst_6 = arith.constant dense<0.000000e+00> : vector<64xf32>
    %18 = vector.multi_reduction <add>, %17, %cst_6 [1] : vector<64x128xf32> to vector<64xf32>
    %19 = vector.shape_cast %18 : vector<64xf32> to vector<64x1xf32>
    %20 = math.log %11 : vector<64x1xf32>
    %cst_7 = arith.constant dense<0.000000e+00> : vector<64xf32>
    %21 = vector.multi_reduction <add>, %4, %cst_7 [1] : vector<64x128xf32> to vector<64xf32>
    %22 = vector.shape_cast %21 : vector<64xf32> to vector<64x1xf32>
    %23 = arith.mulf %20, %22 : vector<64x1xf32>
    %24 = arith.subf %19, %23 : vector<64x1xf32>
    %c0_8 = arith.constant 0 : index
    %c0_9 = arith.constant 0 : index
    %25 = vector.load %arg5[%c0_8, %c0_9] : memref<1x1xf32, #tpu.memory_space<vmem>>, vector<1x1xf32>
    %26 = vector.shape_cast %24 : vector<64x1xf32> to vector<1x64x1xf32>
    %cst_10 = arith.constant dense<0.000000e+00> : vector<1xf32>
    %27 = vector.multi_reduction <add>, %26, %cst_10 [1, 2] : vector<1x64x1xf32> to vector<1xf32>
    %28 = vector.shape_cast %27 : vector<1xf32> to vector<1x1x1xf32>
    %29 = vector.extract %28[0, 0, 0] : f32 from vector<1x1x1xf32>
    %30 = vector.broadcast %29 : f32 to vector<1x1xf32>
    %31 = arith.addf %25, %30 : vector<1x1xf32>
    %c0_11 = arith.constant 0 : index
    %c0_12 = arith.constant 0 : index
    %32 = vector.load %arg5[%c0_11, %c0_12] : memref<1x1xf32, #tpu.memory_space<vmem>>, vector<1x1xf32>
    tpu.vector_store %arg5[%c0_11, %c0_12], %31 {strides = array<i32>} : memref<1x1xf32, #tpu.memory_space<vmem>>, vector<1x1xf32>,
    %c0_i32_13 = arith.constant 0 : i32
    %33 = arith.cmpi eq, %arg1, %c0_i32_13 : i32
    %34 = arith.extui %33 : i1 to i32
    %c0_i32_14 = arith.constant 0 : i32
    %35 = arith.cmpi ne, %34, %c0_i32_14 : i32
    scf.if %35 {
      %c0_15 = arith.constant 0 : index
      %c0_16 = arith.constant 0 : index
      %36 = vector.load %arg5[%c0_15, %c0_16] : memref<1x1xf32, #tpu.memory_space<vmem>>, vector<1x1xf32>
      %37 = vector.shape_cast %36 : vector<1x1xf32> to vector<1x1xf32>
      %38 = vector.broadcast %37 : vector<1x1xf32> to vector<8x128xf32>
      %c0_17 = arith.constant 0 : index
      %c0_18 = arith.constant 0 : index
      %39 = vector.load %arg4[%c0_17, %c0_18] : memref<8x128xf32, #tpu.memory_space<vmem>>, vector<8x128xf32>
      tpu.vector_store %arg4[%c0_17, %c0_18], %38 {strides = array<i32>} : memref<8x128xf32, #tpu.memory_space<vmem>>, vector<8x128xf32>,
    } else {
    }
    return
  }
  func.func @transform_0(%arg0: i32, %arg1: i32) -> (i32, i32) {
    %c1_i32 = arith.constant 1 : i32
    %0 = arith.muli %arg0, %c1_i32 : i32
    %1 = arith.addi %0, %arg1 : i32
    %c0_i32 = arith.constant 0 : i32
    %c0_i32_0 = arith.constant 0 : i32
    return %1, %c0_i32 : i32, i32
  }
  func.func @transform_1(%arg0: i32, %arg1: i32) -> (i32, i32) {
    %c1_i32 = arith.constant 1 : i32
    %0 = arith.muli %arg0, %c1_i32 : i32
    %1 = arith.addi %0, %arg1 : i32
    %c0_i32 = arith.constant 0 : i32
    %c0_i32_0 = arith.constant 0 : i32
    return %1, %c0_i32 : i32, i32
  }
  func.func @transform_2(%arg0: i32, %arg1: i32) -> (i32, i32) {
    %c0_i32 = arith.constant 0 : i32
    %c0_i32_0 = arith.constant 0 : i32
    return %arg0, %c0_i32 : i32, i32
  }
}

</mosaic_0001>

<bundles_post_ra>
// kernel: tpu_custom_call.1
= control target key start
LH: loop header
LB: loop body
LE: loop exit
PB: predicated region body
PF: predicated region fallthrough
CT: control target
= control target key end

     0   :  { %7 = vsyncpa [#allocation4], 0  ;;  %s507_s0 = inlined_call_operand.hbm [shape: f32[64,128], index: 0, kind: input, shape index: {}]   ;;  %s508_s1 = inlined_call_operand.hbm [shape: f32[64,128], index: 1, kind: input, shape index: {}]   ;;  %s509_s2 = inlined_call_operand.hbm [shape: f32[8,128], index: 2, kind: output, shape index: {}]  }
   0x1   :  { %8 = vsyncpa [#allocation7], 0 }
   0x2   :  { %9 = vsyncpa [#allocation5], 0  ;;  %s18_s11 = sshll.u32 %s507_s0, 4  ;;  %s434_s12 = smov [#allocation3]   ;;  %s19_s11 = int_to_ptr.hbm [resolvable:$true] %s18_s11 }
   0x3   :  { %s20_s13 = sshll.u32 %s434_s12, 4  ;;  %s35_s16 = sshll.u32 %s508_s1, 4  ;;  %s21_s13 = int_to_ptr.vmem [resolvable:$true] %s20_s13  ;;  %s36_s16 = int_to_ptr.hbm [resolvable:$true] %s35_s16 }
   0x4   :  { %s435_s17 = smov 128   ;;  %s436_s18 = smov 8  }
   0x5   :  { %26 = dma.hbm_to_vmem [thread:$0]  %s19_s11, 1024, %s21_s13, [#allocation4], %s435_s17, %s435_s17, %s436_s18  }
   0x6   :  { %s437_s19 = smov [#allocation6]  }
   0x7   :  { %s37_s20 = sshll.u32 %s437_s19, 4  ;;  %s38_s20 = int_to_ptr.vmem [resolvable:$true] %s37_s20 }
   0x8   :  { %43 = dma.hbm_to_vmem [thread:$0]  %s36_s16, 1024, %s38_s20, [#allocation7], %s435_s17, %s435_s17, %s436_s18  }
   0x9   :  { %428 = dma.done.wait [#allocation4], 1024  }
   0xa   :  { %429 = vsyncadd [#allocation4], 4294966272 }
   0xb   :  { %430 = dma.done.wait [#allocation7], 1024  }
   0xc   :  { %431 = vsyncadd [#allocation7], 4294966272  ;;  %v66_v0 = vld [vmem:[#allocation3 + $0x20] sm:$0xff]  ;;  %v64_v1 = vld [vmem:[#allocation3 + $0x10] sm:$0xff]  ;;  %vm239_vm0 = vcmask 7168   ;;  %vm60_vm1 = vcmask 0  }
   0xd   :  { %v62_v2 = vld [vmem:[#allocation3] sm:$0xff]  ;;  %86 = vmax.xlane.f32.xlu2 %v66_v0  ;;  %82 = vmax.xlane.f32.xlu1 %v64_v1  ;;  %v67_v3 = vld [vmem:[#allocation3 + $0x28] sm:$0xff]  ;;  %v65_v4 = vld [vmem:[#allocation3 + $0x18] sm:$0xff]  ;;  %s440_s1 = smov [#allocation8]   ;;  %s286_s24 = sshll.u32 %s509_s2, 4  ;;  %s287_s24 = int_to_ptr.hbm [resolvable:$true] %s286_s24 }
   0xe   :  { %78 = vmax.xlane.f32.xlu0 %v62_v2  ;;  %v63_v5 = vld [vmem:[#allocation3 + $0x8] sm:$0xff]  ;;  %v69_v6 = vld [vmem:[#allocation3 + $0x38] sm:$0xff]  ;;  %v68_v7 = vld [vmem:[#allocation3 + $0x30] sm:$0xff]  ;;  %s284_s21 = sshll.u32 %s440_s1, 4  ;;  %s285_s21 = int_to_ptr.vmem [resolvable:$true] %s284_s21 }
   0xf   :  { %v70_v37 = vld [vmem:[#allocation6] sm:$0xff]  ;;  %v73_v40 = vld [vmem:[#allocation6 + $0x18] sm:$0xff]  ;;  %v71_v42 = vld [vmem:[#allocation6 + $0x8] sm:$0xff] }
  0x10   :  { %v462_v43 = vld [vmem:[#allocation6 + $0x30] sm:$0xff]  ;;  %v464_v44 = vld [vmem:[#allocation6 + $0x20] sm:$0xff]  ;;  %v75_v46 = vld [vmem:[#allocation6 + $0x28] sm:$0xff] }
  0x11   :  { %v72_v45 = vld [vmem:[#allocation6 + $0x10] sm:$0xff] }
  0x15   :  { %88 = vmax.xlane.f32.xlu2 %v67_v3  ;;  %84 = vmax.xlane.f32.xlu1 %v65_v4 }
  0x16   :  { %80 = vmax.xlane.f32.xlu0 %v63_v5 }
  0x1d   :  { %92 = vmax.xlane.f32.xlu1 %v69_v6 }
  0x1e   :  { %90 = vmax.xlane.f32.xlu0 %v68_v7 }
  0x80   :  { %v87_v8 = vpop.xlane.xlu2 %86  ;;  %v83_v9 = vpop.xlane.xlu1 %82 }
  0x81   :  { %v96_v10 = vsub.f32 %v64_v1, %v83_v9  ;;  %v79_v11 = vpop.xlane.xlu0 %78  ;;  %v98_v26 = vsub.f32 %v66_v0, %v87_v8 }
  0x82   :  { %v94_v12 = vsub.f32 %v62_v2, %v79_v11 }
  0x83   :  { %v106_v13 = vmul.f32 1.442695, %v96_v10  ;;  %v110_v31 = vmul.f32 1.442695, %v98_v26 }
  0x84   :  { %v102_v14 = vmul.f32 1.442695, %v94_v12 }
  0x85   :  { %308 = vpow2.f32 %v106_v13 }
  0x86   :  { %310 = vpow2.f32 %v102_v14 }
  0x88   :  { %v89_v15 = vpop.xlane.xlu2 %88  ;;  %v85_v16 = vpop.xlane.xlu1 %84 }
  0x89   :  { %v99_v17 = vsub.f32 %v67_v3, %v89_v15  ;;  %v97_v18 = vsub.f32 %v65_v4, %v85_v16  ;;  %v81_v19 = vpop.xlane.xlu0 %80 }
  0x8a   :  { %v95_v20 = vsub.f32 %v63_v5, %v81_v19 }
  0x8b   :  { %v112_v21 = vmul.f32 1.442695, %v99_v17  ;;  %v108_v22 = vmul.f32 1.442695, %v97_v18  ;;  %v309_v23 = vpop.eup %308 }
  0x8c   :  { %v104_v24 = vmul.f32 1.442695, %v95_v20  ;;  %v311_v25 = vpop.eup %310  ;;  %122 = vadd.xlane.f32.xlu1 %v309_v23 }
  0x8d   :  { %312 = vpow2.f32 %v112_v21  ;;  %118 = vadd.xlane.f32.xlu2 %v311_v25 }
  0x8e   :  { %314 = vpow2.f32 %v108_v22 }
  0x8f   :  { %316 = vpow2.f32 %v104_v24 }
  0x90   :  { %v93_v29 = vpop.xlane.xlu1 %92 }
  0x91   :  { %v91_v27 = vpop.xlane.xlu0 %90  ;;  %v101_v35 = vsub.f32 %v69_v6, %v93_v29  ;;  %v77_v29 = vld [vmem:[#allocation6 + $0x38] sm:$0xff] }
  0x92   :  { %v100_v28 = vsub.f32 %v68_v7, %v91_v27 }
  0x93   :  { %v313_v30 = vpop.eup %312  ;;  %v116_v36 = vmul.f32 1.442695, %v101_v35 }
  0x94   :  { %v315_v32 = vpop.eup %314  ;;  %v114_v33 = vmul.f32 1.442695, %v100_v28  ;;  %128 = vadd.xlane.f32.xlu1 %v313_v30 }
  0x95   :  { %v317_v34 = vpop.eup %316  ;;  %124 = vadd.xlane.f32.xlu2 %v315_v32 }
  0x96   :  { %318 = vpow2.f32 %v114_v33  ;;  %120 = vadd.xlane.f32.xlu0 %v317_v34 }
  0x97   :  { %320 = vpow2.f32 %v110_v31 }
  0x98   :  { %322 = vpow2.f32 %v116_v36 }
  0x9c   :  { %v319_v38 = vpop.eup %318  ;;  %206 = vadd.xlane.f32.xlu1 %v70_v37 }
  0x9d   :  { %v321_v39 = vpop.eup %320  ;;  %130 = vadd.xlane.f32.xlu2 %v319_v38 }
  0x9e   :  { %126 = vadd.xlane.f32.xlu0 %v321_v39  ;;  %v323_v41 = vpop.eup %322 }
  0xa4   :  { %212 = vadd.xlane.f32.xlu1 %v73_v40 }
  0xa5   :  { %208 = vadd.xlane.f32.xlu2 %v71_v42 }
  0xa6   :  { %132 = vadd.xlane.f32.xlu0 %v323_v41 }
  0xac   :  { %218 = vadd.xlane.f32.xlu1 %v462_v43 }
  0xad   :  { %210 = vadd.xlane.f32.xlu2 %v72_v45 }
  0xae   :  { %214 = vadd.xlane.f32.xlu0 %v464_v44 }
  0xb5   :  { %216 = vadd.xlane.f32.xlu2 %v75_v46 }
  0xff   :  { %v468_v47 = vpop.xlane.xlu1 %122 }
 0x100   :  { %v470_v48 = vpop.xlane.xlu2 %118  ;;  %v136_v49 = vmul.f32 1e-08, %v468_v47 }
 0x101   :  { %v134_v50 = vmul.f32 1e-08, %v470_v48 }
 0x102   :  { %v144_v52 = vadd.f32 %v309_v23, %v136_v49 }
 0x103   :  { %v142_v51 = vadd.f32 %v311_v25, %v134_v50 }
 0x105   :  { %324 = vlog2.f32 %v142_v51 }
 0x106   :  { %326 = vlog2.f32 %v144_v52 }
 0x107   :  { %v474_v53 = vpop.xlane.xlu1 %128 }
 0x108   :  { %v476_v54 = vpop.xlane.xlu2 %124  ;;  %v139_v56 = vmul.f32 1e-08, %v474_v53 }
 0x109   :  { %v478_v55 = vpop.xlane.xlu0 %120  ;;  %v137_v57 = vmul.f32 1e-08, %v476_v54 }
 0x10a   :  { %v135_v58 = vmul.f32 1e-08, %v478_v55  ;;  %v147_v63 = vadd.f32 %v313_v30, %v139_v56 }
 0x10b   :  { %v325_v59 = vpop.eup %324  ;;  %v145_v60 = vadd.f32 %v315_v32, %v137_v57 }
 0x10c   :  { %v143_v61 = vadd.f32 %v317_v34, %v135_v58  ;;  %v151_v62 = vmul.f32 0.6931472, %v325_v59  ;;  %v327_v1 = vpop.eup %326 }
 0x10d   :  { %328 = vlog2.f32 %v145_v60  ;;  %v155_v6 = vmul.f32 0.6931472, %v327_v1 }
 0x10e   :  { %330 = vlog2.f32 %v143_v61  ;;  %v166_v0 = vmul.f32 %v151_v62, %v70_v37 }
 0x10f   :  { %332 = vlog2.f32 %v147_v63  ;;  %v168_v13 = vmul.f32 %v155_v6, %v72_v45  ;;  %v207_v33 = vpop.xlane.xlu1 %206 }
 0x110   :  { %174 = vadd.xlane.f32.xlu0 %v166_v0  ;;  %v131_v2 = vpop.xlane.xlu2 %130 }
 0x111   :  { %v127_v3 = vpop.xlane.xlu0 %126  ;;  %v140_v4 = vmul.f32 1e-08, %v131_v2 }
 0x112   :  { %v138_v5 = vmul.f32 1e-08, %v127_v3 }
 0x113   :  { %v329_v7 = vpop.eup %328  ;;  %v148_v8 = vadd.f32 %v319_v38, %v140_v4 }
 0x114   :  { %v146_v9 = vadd.f32 %v321_v39, %v138_v5  ;;  %v331_v10 = vpop.eup %330  ;;  %v157_v11 = vmul.f32 0.6931472, %v329_v7 }
 0x115   :  { %334 = vlog2.f32 %v148_v8  ;;  %v153_v12 = vmul.f32 0.6931472, %v331_v10  ;;  %v333_v15 = vpop.eup %332 }
 0x116   :  { %336 = vlog2.f32 %v146_v9  ;;  %v169_v14 = vmul.f32 %v157_v11, %v73_v40  ;;  %v161_v19 = vmul.f32 0.6931472, %v333_v15 }
 0x117   :  { %v167_v16 = vmul.f32 %v153_v12, %v71_v42  ;;  %v213_v35 = vpop.xlane.xlu1 %212 }
 0x118   :  { %178 = vadd.xlane.f32.xlu0 %v168_v13  ;;  %180 = vadd.xlane.f32.xlu2 %v169_v14  ;;  %v171_v25 = vmul.f32 %v161_v19, %v75_v46  ;;  %v209_v32 = vpop.xlane.xlu2 %208 }
 0x119   :  { %v483_v17 = vpop.xlane.xlu0 %132  ;;  %176 = vadd.xlane.f32.xlu1 %v167_v16 }
 0x11a   :  { %v141_v18 = vmul.f32 1e-08, %v483_v17 }
 0x11b   :  { %v335_v20 = vpop.eup %334 }
 0x11c   :  { %v149_v21 = vadd.f32 %v323_v41, %v141_v18  ;;  %v337_v22 = vpop.eup %336  ;;  %v163_v23 = vmul.f32 0.6931472, %v335_v20 }
 0x11d   :  { %v159_v24 = vmul.f32 0.6931472, %v337_v22 }
 0x11e   :  { %338 = vlog2.f32 %v149_v21  ;;  %v172_v26 = vmul.f32 %v163_v23, %v462_v43 }
 0x11f   :  { %v170_v27 = vmul.f32 %v159_v24, %v464_v44  ;;  %340 = vlog2.f32 %v468_v47  ;;  %v219_v41 = vpop.xlane.xlu1 %218 }
 0x120   :  { %184 = vadd.xlane.f32.xlu0 %v171_v25  ;;  %186 = vadd.xlane.f32.xlu2 %v172_v26  ;;  %v211_v34 = vpop.xlane.xlu2 %210  ;;  %342 = vlog2.f32 %v470_v48 }
 0x121   :  { %182 = vadd.xlane.f32.xlu1 %v170_v27  ;;  %v215_v36 = vpop.xlane.xlu0 %214  ;;  %344 = vlog2.f32 %v476_v54 }
 0x122   :  { %346 = vlog2.f32 %v478_v55 }
 0x123   :  { %348 = vlog2.f32 %v474_v53 }
 0x124   :  { %v339_v28 = vpop.eup %338  ;;  %350 = vlog2.f32 %v131_v2 }
 0x125   :  { %v165_v30 = vmul.f32 0.6931472, %v339_v28  ;;  %v341_v37 = vpop.eup %340  ;;  %352 = vlog2.f32 %v127_v3 }
 0x126   :  { %v343_v40 = vpop.eup %342  ;;  %v195_v48 = vmul.f32 0.6931472, %v341_v37  ;;  %354 = vlog2.f32 %v483_v17 }
 0x127   :  { %v173_v31 = vmul.f32 %v165_v30, %v77_v29  ;;  %v345_v42 = vpop.eup %344  ;;  %v191_v44 = vmul.f32 0.6931472, %v343_v40 }
 0x128   :  { %220 = vadd.xlane.f32.xlu0 %v77_v29  ;;  %v217_v38 = vpop.xlane.xlu2 %216  ;;  %v347_v43 = vpop.eup %346  ;;  %v197_v47 = vmul.f32 0.6931472, %v345_v42  ;;  %v224_v50 = vmul.f32 %v211_v34, %v195_v48 }
 0x129   :  { %188 = vadd.xlane.f32.xlu1 %v173_v31  ;;  %v222_v45 = vmul.f32 %v207_v33, %v191_v44  ;;  %v193_v46 = vmul.f32 0.6931472, %v347_v43  ;;  %v349_v55 = vpop.eup %348  ;;  %v438_v31 = vmov 0.0  }
 0x12a   :  { %v351_v57 = vpop.eup %350  ;;  %v225_v58 = vmul.f32 %v213_v35, %v197_v47  ;;  %v201_v0 = vmul.f32 0.6931472, %v349_v55  ;;  %61 = vst.msk [vmem:[#allocation2] sm:$0x1] %vm60_vm1, %v438_v31 }
 0x12b   :  { %v223_v49 = vmul.f32 %v209_v32, %v193_v46  ;;  %v353_v53 = vpop.eup %352  ;;  %v203_v3 = vmul.f32 0.6931472, %v351_v57 }
 0x12c   :  { %v199_v2 = vmul.f32 0.6931472, %v353_v53  ;;  %v227_v7 = vmul.f32 %v217_v38, %v201_v0  ;;  %v355_v16 = vpop.eup %354 }
 0x12d   :  { %v228_v13 = vmul.f32 %v219_v41, %v203_v3  ;;  %v205_v22 = vmul.f32 0.6931472, %v355_v16 }
 0x12e   :  { %v226_v6 = vmul.f32 %v215_v36, %v199_v2 }
 0x131   :  { %v238_v40 = vld [vmem:[#allocation2] sm:$0x1] }
 0x183   :  { %v175_v39 = vpop.xlane.xlu0 %174 }
 0x184   :  { %v230_v51 = vsub.f32 %v175_v39, %v222_v45  ;;  %v439_v39 = vmov 0  }
 0x185   :  { %306 = vset.pattern.permute.xlu0 %v439_v39 }
 0x186   :  { %v240_v61 = vsel %vm239_vm0, %v230_v51, 0.0 }
 0x18b   :  { %v181_v52 = vpop.xlane.xlu2 %180  ;;  %v179_v54 = vpop.xlane.xlu0 %178 }
 0x18c   :  { %v177_v56 = vpop.xlane.xlu1 %176  ;;  %v232_v60 = vsub.f32 %v179_v54, %v224_v50  ;;  %v233_v62 = vsub.f32 %v181_v52, %v225_v58 }
 0x18d   :  { %v231_v59 = vsub.f32 %v177_v56, %v223_v49 }
 0x18e   :  { %v243_v4 = vsel %vm239_vm0, %v232_v60, 0.0  ;;  %v245_v8 = vsel %vm239_vm0, %v233_v62, 0.0 }
 0x18f   :  { %v241_v63 = vsel %vm239_vm0, %v231_v59, 0.0 }
 0x190   :  { %v242_v1 = vadd.f32 %v241_v63, %v240_v61 }
 0x192   :  { %v244_v5 = vadd.f32 %v243_v4, %v242_v1 }
 0x193   :  { %v185_v9 = vpop.xlane.xlu0 %184  ;;  %v187_v10 = vpop.xlane.xlu2 %186 }
 0x194   :  { %v183_v11 = vpop.xlane.xlu1 %182  ;;  %v246_v12 = vadd.f32 %v245_v8, %v244_v5  ;;  %v235_v15 = vsub.f32 %v185_v9, %v227_v7  ;;  %v236_v18 = vsub.f32 %v187_v10, %v228_v13 }
 0x195   :  { %v234_v14 = vsub.f32 %v183_v11, %v226_v6 }
 0x196   :  { %v249_v20 = vsel %vm239_vm0, %v235_v15, 0.0  ;;  %v251_v23 = vsel %vm239_vm0, %v236_v18, 0.0 }
 0x197   :  { %v247_v17 = vsel %vm239_vm0, %v234_v14, 0.0 }
 0x198   :  { %v248_v19 = vadd.f32 %v247_v17, %v246_v12 }
 0x19a   :  { %v250_v21 = vadd.f32 %v249_v20, %v248_v19 }
 0x19b   :  { %v221_v24 = vpop.xlane.xlu0 %220 }
 0x19c   :  { %v229_v25 = vmul.f32 %v221_v24, %v205_v22  ;;  %v252_v26 = vadd.f32 %v251_v23, %v250_v21  ;;  %v189_v27 = vpop.xlane.xlu1 %188 }
 0x19e   :  { %v237_v28 = vsub.f32 %v189_v27, %v229_v25 }
 0x1a0   :  { %v253_v29 = vsel %vm239_vm0, %v237_v28, 0.0 }
 0x1a1   :  { %v254_v30 = vadd.f32 %v253_v29, %v252_v26 }
 0x1a3   :  { %255 = vadd.xlane.f32.xlu2 %v254_v30 }
 0x216   :  { %v256_v32 = vpop.xlane.xlu2 %255 }
 0x217   :  { %v257_v33 = vrot.slane %v256_v32, 4 }
 0x219   :  { %v258_v34 = vadd.f32 %v257_v33, %v256_v32 }
 0x21b   :  { %v259_v35 = vrot.slane %v258_v34, 2 }
 0x21d   :  { %v260_v36 = vadd.f32 %v259_v35, %v258_v34 }
 0x21f   :  { %v261_v37 = vrot.slane %v260_v36, 1 }
 0x221   :  { %v262_v38 = vadd.f32 %v261_v37, %v260_v36 }
 0x223   :  { %297 = vpush %v262_v38 }
 0x254   :  { %s298_s0 = spop %297 }
 0x255   :  { %v264_v41 = vstv %s298_s0 }
 0x256   :  { %v265_v42 = vadd.f32 %v264_v41, %v238_v40 }
 0x258   :  { %267 = vst.msk [vmem:[#allocation2] sm:$0x1] %vm60_vm1, %v265_v42 }
 0x25f   :  { %v307_v43 = vld [vmem:[#allocation2] ss:$0 sm:$0xff] }
 0x260   :  { %275 = vperm.xlu0 %306, %v307_v43  }
 0x2d2   :  { %v276_v44 = vpop.permute.xlu0 %275 }
 0x2d3   :  { %278 = vst [vmem:[#allocation8] sm:$0xff] %v276_v44 }
 0x2d4   :  { %289 = dma.vmem_to_hbm [thread:$0]  %s285_s21, 128, %s287_s24, [#allocation5]  }
 0x2d5   :  { %432 = dma.done.wait [#allocation5], 128  }
 0x2d6   :  { %433 = vsyncadd [#allocation5], 4294967168 }
 0x2d7   :  { %294 = vsyncpa [#allocation4], 1 }
 0x2d8   :  { %295 = vsyncpa [#allocation7], 1 }
 0x2d9   :  { %296 = vsyncpa [#allocation5], 1 }

</bundles_post_ra>
